<compile_context>
chip_gen: v6e
topology: v6e:2x2x1
jax: 0.10.0
libtpu: 0.0.40
codegen_flags: <defaults>
</compile_context>

<pallas_src>
import functools

import jax
import jax.numpy as jnp
from jax.experimental import pallas as pl
from jax.experimental.pallas import tpu as pltpu

LANES = 128
SUBLANES = 8
_MAX_TILE_ROWS = 8192   # 8192 x 128 x 4 B = 4 MiB per f32 input tile
_ROWS_PER_STEP = 256    # in-kernel sub-slice (256 x 128 f32 = 32 vregs per operand)


def _cdiv(a, b):
    return -(-a // b)


def _round_up(a, b):
    return _cdiv(a, b) * b


@functools.lru_cache(maxsize=1)
def _tensorcores_per_chip():
    """Best-effort TensorCores/chip: 2 on v7x (and v4/v5p megacore), 1 on v5e/v6e."""
    try:
        info = pltpu.get_tpu_info()
        for attr in ("num_cores", "core_count", "num_tensorcores", "tensor_core_count"):
            v = getattr(info, attr, None)
            if isinstance(v, int) and v > 0:
                return v
    except Exception:
        pass
    try:
        kind = jax.devices()[0].device_kind.lower()
        if ("v4" in kind) or ("v5p" in kind) or ("7" in kind):
            return 2
    except Exception:
        pass
    return 1


def _bce_acc_kernel(pred_ref, tgt_ref, loss_ref, corr_ref, *, hard_labels, rows_per_step):
    """One grid step: fold a (tile_rows, 128) tile onto the resident (1,8,128) partials."""
    t = pl.program_id(1)  # reduction ("arbitrary") axis

    @pl.when(t == 0)
    def _init():
        loss_ref[...] = jnp.zeros_like(loss_ref)
        corr_ref[...] = jnp.zeros_like(corr_ref)

    tile_rows = pred_ref.shape[0]
    n_sub = tile_rows // rows_per_step
    groups = rows_per_step // SUBLANES

    def sub_fold(i, carry):
        loss_acc, corr_acc = carry
        r0 = pl.multiple_of(i * rows_per_step, rows_per_step)
        x = pred_ref[pl.ds(r0, rows_per_step), :].astype(jnp.float32)
        y = tgt_ref[pl.ds(r0, rows_per_step), :].astype(jnp.float32)

        # BCEWithLogitsLoss elementwise term (stable): max(x,0) - x*y + log1p(exp(-|x|)).
        # Padded elements (x=-1e9, y=0) contribute exactly 0.
        bce = jnp.maximum(x, 0.0) - x * y + jnp.log1p(jnp.exp(-jnp.abs(x)))

        # Accuracy numerator mirrors the PyTorch module: (outputs > 0.5) == targets
        # (raw logits thresholded at 0.5, not sigmoid).
        pred_pos = x > 0.5
        if hard_labels:
            # y is exactly 0/1: one select instead of two casts + f32 compare.
            correct = jnp.where(pred_pos, y, 1.0 - y)
        else:
            correct = (pred_pos.astype(jnp.float32) == y).astype(jnp.float32)

        # Fold (rows_per_step,128) -> (8,128): layout-free reshape + cross-vreg VPU adds.
        loss_acc = loss_acc + bce.reshape(groups, SUBLANES, LANES).sum(axis=0)
        corr_acc = corr_acc + correct.reshape(groups, SUBLANES, LANES).sum(axis=0)
        return loss_acc, corr_acc

    zeros = jnp.zeros((SUBLANES, LANES), jnp.float32)
    loss_p, corr_p = jax.lax.fori_loop(0, n_sub, sub_fold, (zeros, zeros), unroll=True)

    loss_ref[...] += loss_p[None]
    corr_ref[...] += corr_p[None]


def binary_classification_loss(pred, targets, *, max_tile_rows=_MAX_TILE_ROWS):
    """Mirrors BinaryClassificationLoss.forward: returns (loss, accuracy)."""
    # --- PyTorch glue: view vs. one-hot branch (no f32 casts in the wrapper) -------
    if pred.size == targets.size:
        denom_rows = pred.shape[0]          # targets.view(pred.shape).size(0)
        tgt_flat = targets.reshape(-1)      # native dtype; cast in-kernel
        if tgt_flat.dtype == jnp.bool_:
            tgt_flat = tgt_flat.astype(jnp.int8)
            hard_labels = True
        else:
            hard_labels = False             # possibly soft labels -> exact semantics
    else:
        # F.one_hot(targets.long(), 2): exact 0/1 -> int8 saves 4x HBM bytes.
        denom_rows = targets.shape[0]
        tgt_flat = jax.nn.one_hot(targets.astype(jnp.int32), 2, dtype=jnp.int8).reshape(-1)
        hard_labels = True

    total = pred.size
    pred_flat = pred.reshape(-1)            # native dtype (bf16 stays bf16 in HBM)

    # --- lane-dense layout + tiling -------------------------------------------------
    max_tile_rows = max(32, (int(max_tile_rows) // 32) * 32)
    rows_needed = max(1, _cdiv(total, LANES))

    tile_rows = min(max_tile_rows, _round_up(rows_needed, 32))
    row_align = _ROWS_PER_STEP if tile_rows >= _ROWS_PER_STEP else 32
    tile_rows = _round_up(tile_rows, row_align)

    tiles_needed = _cdiv(rows_needed, tile_rows)
    num_splits = 2 if (_tensorcores_per_chip() >= 2 and tiles_needed >= 2) else 1
    tiles_per_split = _cdiv(tiles_needed, num_splits)
    tiles_total = num_splits * tiles_per_split
    # Rebalance the tile so we never DMA mostly-padding tiles.
    tile_rows = min(tile_rows, _round_up(_cdiv(rows_needed, tiles_total), row_align))
    rows_per_step = min(_ROWS_PER_STEP, tile_rows)

    rows_padded = tiles_total * tile_rows
    pad_elems = rows_padded * LANES - total
    if pad_elems:
        # Pad values chosen so padded elements contribute 0 to the BCE sum and
        # exactly 1 to "correct" (subtracted below). -1e9 is finite: no -inf*0 NaN.
        pred_flat = jnp.pad(pred_flat, (0, pad_elems), constant_values=-1e9)
        tgt_flat = jnp.pad(tgt_flat, (0, pad_elems), constant_values=0)
    pred2d = pred_flat.reshape(rows_padded, LANES)
    tgt2d = tgt_flat.reshape(rows_padded, LANES)

    row_map = lambda s, t, tps=tiles_per_split: (s * tps + t, 0)
    out_map = lambda s, t: (s, 0, 0)

    grid_spec = pltpu.PrefetchScalarGridSpec(
        num_scalar_prefetch=0,
        grid=(num_splits, tiles_per_split),
        in_specs=[
            pl.BlockSpec((tile_rows, LANES), row_map),
            pl.BlockSpec((tile_rows, LANES), row_map),
        ],
        out_specs=(
            pl.BlockSpec((1, SUBLANES, LANES), out_map),
            pl.BlockSpec((1, SUBLANES, LANES), out_map),
        ),
    )

    kernel = functools.partial(
        _bce_acc_kernel, hard_labels=hard_labels, rows_per_step=rows_per_step)

    loss_parts, corr_parts = pl.pallas_call(
        kernel,
        out_shape=(
            jax.ShapeDtypeStruct((num_splits, SUBLANES, LANES), jnp.float32),
            jax.ShapeDtypeStruct((num_splits, SUBLANES, LANES), jnp.float32),
        ),
        grid_spec=grid_spec,
        compiler_params=pltpu.CompilerParams(
            dimension_semantics=("parallel", "arbitrary"),
            vmem_limit_bytes=48 * 1024 * 1024,
            allow_input_fusion=[True, True],
        ),
    )(pred2d, tgt2d)

    # Tiny cross-lane reduction + normalization in the wrapper.
    loss = jnp.sum(loss_parts) / jnp.float32(total)                       # BCE 'mean'
    correct = jnp.sum(corr_parts) - jnp.float32(pad_elems)                # drop padding
    accuracy = 100.0 * correct / jnp.float32(denom_rows)
    return loss, accuracy


def _reference(pred, targets):
    pred = pred.astype(jnp.float32)
    if pred.size == targets.size:
        t = targets.astype(jnp.float32).reshape(pred.shape)
    else:
        t = jax.nn.one_hot(targets.astype(jnp.int32), 2, dtype=jnp.float32)
    bce = jnp.maximum(pred, 0.0) - pred * t + jnp.log1p(jnp.exp(-jnp.abs(pred)))
    loss = jnp.mean(bce)
    correct = jnp.sum(((pred > 0.5).astype(jnp.float32) == t).astype(jnp.float32))
    acc = 100.0 * correct / t.shape[0]
    return loss, acc


if __name__ == "__main__":
    key = jax.random.PRNGKey(0)
    k1, k2, k3, k4, k5, k6 = jax.random.split(key, 6)

    # --- Test 1: one-hot branch (pred (8,2) logits, integer labels (8,)) -----------
    pred = jax.random.normal(k1, (8, 2), dtype=jnp.float32)
    targets = jax.random.randint(k2, (8,), 0, 2, dtype=jnp.int32)
    loss, acc = binary_classification_loss(pred, targets)
    jax.block_until_ready((loss, acc))
    ref_loss, ref_acc = _reference(pred, targets)
    assert jnp.allclose(loss, ref_loss, rtol=1e-5, atol=1e-6), (loss, ref_loss)
    assert jnp.allclose(acc, ref_acc, rtol=1e-5, atol=1e-3), (acc, ref_acc)

    # --- Test 2: same-numel (soft-label path); tiny tiles force a multi-tile grid ---
    pred2 = jax.random.normal(k3, (2100, 4), dtype=jnp.float32)
    targets2 = (jax.random.uniform(k4, (2100, 4)) > 0.5).astype(jnp.float32)
    loss2, acc2 = binary_classification_loss(pred2, targets2, max_tile_rows=32)
    jax.block_until_ready((loss2, acc2))
    ref_loss2, ref_acc2 = _reference(pred2, targets2)
    assert jnp.allclose(loss2, ref_loss2, rtol=1e-4, atol=1e-5), (loss2, ref_loss2)
    assert jnp.allclose(acc2, ref_acc2, rtol=1e-5, atol=1e-3), (acc2, ref_acc2)

    # --- Test 3: bf16 logits stay bf16 in HBM (in-kernel cast), one-hot branch ------
    pred3 = jax.random.normal(k5, (64, 2), dtype=jnp.bfloat16)
    targets3 = jax.random.randint(k6, (64,), 0, 2, dtype=jnp.int32)
    loss3, acc3 = binary_classification_loss(pred3, targets3)
    jax.block_until_ready((loss3, acc3))
    ref_loss3, ref_acc3 = _reference(pred3, targets3)
    assert jnp.allclose(loss3, ref_loss3, rtol=1e-4, atol=1e-5), (loss3, ref_loss3)
    assert jnp.allclose(acc3, ref_acc3, rtol=1e-5, atol=1e-3), (acc3, ref_acc3)

    print("KERNEL_OK")
</pallas_src>

<mosaic_0001>
module attributes {stable_mosaic.version = 11 : i64} {
  func.func @_bce_acc_kernel(%arg0: i32, %arg1: i32, %arg2: memref<32x128xf32, #tpu.memory_space<vmem>>, %arg3: memref<32x128xi8, #tpu.memory_space<vmem>>, %arg4: memref<1x8x128xf32, #tpu.memory_space<vmem>>, %arg5: memref<1x8x128xf32, #tpu.memory_space<vmem>>) attributes {dimension_semantics = [#tpu.dimension_semantics<parallel>, #tpu.dimension_semantics<arbitrary>], iteration_bounds = array<i64: 1, 1>, scalar_prefetch = 0 : i64, scratch_operands = 0 : i64, tpu.core_type = #tpu.core_type<tc>, window_params = [{transform_indices = @transform_0, window_bounds = array<i64: 32, 128>}, {transform_indices = @transform_1, window_bounds = array<i64: 32, 128>}, {transform_indices = @transform_2, window_bounds = array<i64: 1, 8, 128>}, {transform_indices = @transform_3, window_bounds = array<i64: 1, 8, 128>}]} {
    %c0_i32 = arith.constant 0 : i32
    %0 = arith.cmpi eq, %arg1, %c0_i32 : i32
    %1 = arith.extui %0 : i1 to i32
    %c0_i32_0 = arith.constant 0 : i32
    %2 = arith.cmpi ne, %1, %c0_i32_0 : i32
    scf.if %2 {
      %cst_21 = arith.constant 0.000000e+00 : f32
      %40 = vector.broadcast %cst_21 : f32 to vector<1x8x128xf32>
      %c0_22 = arith.constant 0 : index
      %c0_23 = arith.constant 0 : index
      %c0_24 = arith.constant 0 : index
      %41 = vector.load %arg4[%c0_22, %c0_23, %c0_24] : memref<1x8x128xf32, #tpu.memory_space<vmem>>, vector<1x8x128xf32>
      tpu.vector_store %arg4[%c0_22, %c0_23, %c0_24], %40 {strides = array<i32>} : memref<1x8x128xf32, #tpu.memory_space<vmem>>, vector<1x8x128xf32>,
      %cst_25 = arith.constant 0.000000e+00 : f32
      %42 = vector.broadcast %cst_25 : f32 to vector<1x8x128xf32>
      %c0_26 = arith.constant 0 : index
      %c0_27 = arith.constant 0 : index
      %c0_28 = arith.constant 0 : index
      %43 = vector.load %arg5[%c0_26, %c0_27, %c0_28] : memref<1x8x128xf32, #tpu.memory_space<vmem>>, vector<1x8x128xf32>
      tpu.vector_store %arg5[%c0_26, %c0_27, %c0_28], %42 {strides = array<i32>} : memref<1x8x128xf32, #tpu.memory_space<vmem>>, vector<1x8x128xf32>,
    } else {
    }
    %cst = arith.constant 0.000000e+00 : f32
    %3 = vector.broadcast %cst : f32 to vector<8x128xf32>
    %c0_i32_1 = arith.constant 0 : i32
    %c32_i32 = arith.constant 32 : i32
    %4 = arith.muli %c0_i32_1, %c32_i32 : i32
    %5 = tpu.assume_multiple %4, 32 : i32
    %6 = arith.index_cast %5 : i32 to index
    %c0 = arith.constant 0 : index
    %7 = vector.load %arg2[%6, %c0] : memref<32x128xf32, #tpu.memory_space<vmem>>, vector<32x128xf32>
    %8 = arith.index_cast %5 : i32 to index
    %c0_2 = arith.constant 0 : index
    %9 = vector.load %arg3[%8, %c0_2] : memref<32x128xi8, #tpu.memory_space<vmem>>, vector<32x128xi8>
    %10 = arith.sitofp %9 : vector<32x128xi8> to vector<32x128xf32>
    %cst_3 = arith.constant 0.000000e+00 : f32
    %11 = vector.broadcast %cst_3 : f32 to vector<32x128xf32>
    %12 = arith.maximumf %7, %11 : vector<32x128xf32>
    %13 = arith.mulf %7, %10 : vector<32x128xf32>
    %14 = arith.subf %12, %13 : vector<32x128xf32>
    %15 = math.absf %7 : vector<32x128xf32>
    %cst_4 = arith.constant 0.000000e+00 : f32
    %16 = vector.broadcast %cst_4 : f32 to vector<32x128xf32>
    %17 = arith.subf %16, %15 : vector<32x128xf32>
    %18 = math.exp %17 : vector<32x128xf32>
    %19 = math.log1p %18 : vector<32x128xf32>
    %20 = arith.addf %14, %19 : vector<32x128xf32>
    %cst_5 = arith.constant 5.000000e-01 : f32
    %21 = vector.broadcast %cst_5 : f32 to vector<32x128xf32>
    %22 = arith.cmpf ogt, %7, %21 : vector<32x128xf32>
    %cst_6 = arith.constant 1.000000e+00 : f32
    %23 = vector.broadcast %cst_6 : f32 to vector<32x128xf32>
    %24 = arith.subf %23, %10 : vector<32x128xf32>
    %25 = arith.select %22, %10, %24 : vector<32x128xi1>, vector<32x128xf32>
    %26 = vector.shape_cast %20 : vector<32x128xf32> to vector<4x8x128xf32>
    %cst_7 = arith.constant dense<0.000000e+00> : vector<8x128xf32>
    %27 = vector.multi_reduction <add>, %26, %cst_7 [0] : vector<4x8x128xf32> to vector<8x128xf32>
    %28 = arith.addf %3, %27 : vector<8x128xf32>
    %29 = vector.shape_cast %25 : vector<32x128xf32> to vector<4x8x128xf32>
    %cst_8 = arith.constant dense<0.000000e+00> : vector<8x128xf32>
    %30 = vector.multi_reduction <add>, %29, %cst_8 [0] : vector<4x8x128xf32> to vector<8x128xf32>
    %31 = arith.addf %3, %30 : vector<8x128xf32>
    %c1_i32 = arith.constant 1 : i32
    %c0_9 = arith.constant 0 : index
    %c0_10 = arith.constant 0 : index
    %c0_11 = arith.constant 0 : index
    %32 = vector.load %arg4[%c0_9, %c0_10, %c0_11] : memref<1x8x128xf32, #tpu.memory_space<vmem>>, vector<1x8x128xf32>
    %33 = vector.shape_cast %28 : vector<8x128xf32> to vector<1x8x128xf32>
    %34 = arith.addf %32, %33 : vector<1x8x128xf32>
    %c0_12 = arith.constant 0 : index
    %c0_13 = arith.constant 0 : index
    %c0_14 = arith.constant 0 : index
    %35 = vector.load %arg4[%c0_12, %c0_13, %c0_14] : memref<1x8x128xf32, #tpu.memory_space<vmem>>, vector<1x8x128xf32>
    tpu.vector_store %arg4[%c0_12, %c0_13, %c0_14], %34 {strides = array<i32>} : memref<1x8x128xf32, #tpu.memory_space<vmem>>, vector<1x8x128xf32>,
    %c0_15 = arith.constant 0 : index
    %c0_16 = arith.constant 0 : index
    %c0_17 = arith.constant 0 : index
    %36 = vector.load %arg5[%c0_15, %c0_16, %c0_17] : memref<1x8x128xf32, #tpu.memory_space<vmem>>, vector<1x8x128xf32>
    %37 = vector.shape_cast %31 : vector<8x128xf32> to vector<1x8x128xf32>
    %38 = arith.addf %36, %37 : vector<1x8x128xf32>
    %c0_18 = arith.constant 0 : index
    %c0_19 = arith.constant 0 : index
    %c0_20 = arith.constant 0 : index
    %39 = vector.load %arg5[%c0_18, %c0_19, %c0_20] : memref<1x8x128xf32, #tpu.memory_space<vmem>>, vector<1x8x128xf32>
    tpu.vector_store %arg5[%c0_18, %c0_19, %c0_20], %38 {strides = array<i32>} : memref<1x8x128xf32, #tpu.memory_space<vmem>>, vector<1x8x128xf32>,
    return
  }
  func.func @transform_0(%arg0: i32, %arg1: i32) -> (i32, i32) {
    %c1_i32 = arith.constant 1 : i32
    %0 = arith.muli %arg0, %c1_i32 : i32
    %1 = arith.addi %0, %arg1 : i32
    %c0_i32 = arith.constant 0 : i32
    %c0_i32_0 = arith.constant 0 : i32
    return %1, %c0_i32 : i32, i32
  }
  func.func @transform_1(%arg0: i32, %arg1: i32) -> (i32, i32) {
    %c1_i32 = arith.constant 1 : i32
    %0 = arith.muli %arg0, %c1_i32 : i32
    %1 = arith.addi %0, %arg1 : i32
    %c0_i32 = arith.constant 0 : i32
    %c0_i32_0 = arith.constant 0 : i32
    return %1, %c0_i32 : i32, i32
  }
  func.func @transform_2(%arg0: i32, %arg1: i32) -> (i32, i32, i32) {
    %c0_i32 = arith.constant 0 : i32
    %c0_i32_0 = arith.constant 0 : i32
    %c0_i32_1 = arith.constant 0 : i32
    return %arg0, %c0_i32, %c0_i32_0 : i32, i32, i32
  }
  func.func @transform_3(%arg0: i32, %arg1: i32) -> (i32, i32, i32) {
    %c0_i32 = arith.constant 0 : i32
    %c0_i32_0 = arith.constant 0 : i32
    %c0_i32_1 = arith.constant 0 : i32
    return %arg0, %c0_i32, %c0_i32_0 : i32, i32, i32
  }
}

</mosaic_0001>

<bundles_post_ra>
// kernel: tpu_custom_call.1
= control target key start
LH: loop header
LB: loop body
LE: loop exit
PB: predicated region body
PF: predicated region fallthrough
CT: control target
= control target key end

     0   :  { %9 = vsyncpa [#allocation3], 0  ;;  %s381_s0 = inlined_call_operand.hbm [shape: f32[32,128], index: 0, kind: input, shape index: {}]   ;;  %s382_s1 = inlined_call_operand.hbm [shape: s8[32,128], index: 1, kind: input, shape index: {}]   ;;  %s383_s2 = inlined_call_operand.hbm [shape: f32[1,8,128], index: 2, kind: output, shape index: {0}]   ;;  %s384_s3 = inlined_call_operand.hbm [shape: f32[1,8,128], index: 3, kind: output, shape index: {1}]  }
   0x1   :  { %10 = vsyncpa [#allocation6], 0 }
   0x2   :  { %11 = vsyncpa [#allocation4], 0 }
   0x3   :  { %12 = vsyncpa [#allocation9], 0  ;;  %s305_s12 = smov [#allocation2]  }
   0x4   :  { %s22_s13 = sshll.u32 %s305_s12, 4  ;;  %s23_s13 = int_to_ptr.vmem [resolvable:$true] %s22_s13 }
   0x5   :  { %s225_s14 = scalar_lea.vmem %s23_s13, 512  ;;  %p230_p1 = scmp.lt.s32.totalorder %s23_s13, %s23_s13 }
   0x6   :  { %p226_p0 = scmp.ne.s32.totalorder %s23_s13, %s225_s14  ;;  %p231_p2 = scmp.lt.s32.totalorder %s225_s14, %s225_s14 }
   0x8   :  { %p232_p3 = por %p231_p2, %p230_p1 }
   0xa   :  { %p233_p4 = pnand %p232_p3, %p226_p0 }
   0xc   :  { %236 = shalt.err (!%p233_p4)
}
   0xd   :  { %s306_s15 = smov 128   ;;  %s307_s16 = smov 8  }
   0xe   :  { %28 = dma.hbm_to_vmem [thread:$0]  %s381_s0, 512, %s23_s13, [#allocation3], %s306_s15, %s306_s15, %s307_s16  }
   0xf   :  { %s308_s19 = smov [#allocation5]  }
  0x10   :  { %s38_s20 = sshll.u32 %s308_s19, 4  ;;  %s39_s20 = int_to_ptr.vmem [resolvable:$true] %s38_s20 }
  0x11   :  { %s245_s21 = scalar_lea.vmem %s39_s20, 128  ;;  %p250_p6 = scmp.lt.s32.totalorder %s39_s20, %s39_s20 }
  0x12   :  { %p246_p5 = scmp.ne.s32.totalorder %s39_s20, %s245_s21  ;;  %p251_p7 = scmp.lt.s32.totalorder %s245_s21, %s245_s21 }
  0x14   :  { %p252_p8 = por %p251_p7, %p250_p6 }
  0x16   :  { %p253_p9 = pnand %p252_p8, %p246_p5 }
  0x18   :  { %256 = shalt.err (!%p253_p9)
}
  0x19   :  { %41 = dma.hbm_to_vmem [thread:$0]  %s382_s1, 128, %s39_s20, [#allocation6]  }
  0x1a   :  { %297 = dma.done.wait [#allocation3], 512  }
  0x1b   :  { %298 = vsyncadd [#allocation3], 4294966784 }
  0x1c   :  { %299 = dma.done.wait [#allocation6], 128  }
  0x1d   :  { %300 = vsyncadd [#allocation6], 4294967168  ;;  %v337_v0 = vld [vmem:[#allocation2] sm:$0xff]  ;;  %v339_v1 = vld [vmem:[#allocation2 + $0x8] sm:$0xff]  ;;  %s309_s0 = smov [#allocation8]  }
  0x1e   :  { %v61_v2 = vld [vmem:[#allocation5] sm:$0xff]  ;;  %v341_v3 = vld [vmem:[#allocation2 + $0x10] sm:$0xff]  ;;  %v343_v4 = vld [vmem:[#allocation2 + $0x18] sm:$0xff]  ;;  %v82_v5 = vand.u32 2147483647, %v337_v0  ;;  %vm138_vm0 = vcmp.gt.f32.partialorder %v337_v0, 0.5 }
  0x1f   :  { %v83_v6 = vand.u32 2147483647, %v339_v1  ;;  %v62_v7 = vunpack.c.0.s8 %v61_v2  ;;  %v63_v8 = vunpack.c.1.s8 %v61_v2  ;;  %v64_v9 = vunpack.c.2.s8 %v61_v2  ;;  %s180_s1 = sshll.u32 %s309_s0, 4  ;;  %s181_s1 = int_to_ptr.vmem [resolvable:$true] %s180_s1 }
  0x20   :  { %v65_v10 = vunpack.c.3.s8 %v61_v2  ;;  %v84_v11 = vand.u32 2147483647, %v341_v3  ;;  %v85_v12 = vand.u32 2147483647, %v343_v4  ;;  %v86_v13 = vsub.f32 0.0, %v82_v5  ;;  %s257_s24 = scalar_lea.vmem %s181_s1, 128  ;;  %p262_p11 = scmp.lt.s32.totalorder %s181_s1, %s181_s1 }
  0x21   :  { %v87_v14 = vsub.f32 0.0, %v83_v6  ;;  %v66_v19 = vcvt.s32.f32 %v62_v7  ;;  %v67_v20 = vcvt.s32.f32 %v63_v8  ;;  %v68_v21 = vcvt.s32.f32 %v64_v9  ;;  %p258_p10 = scmp.ne.s32.totalorder %s181_s1, %s257_s24  ;;  %p263_p12 = scmp.lt.s32.totalorder %s257_s24, %s257_s24 }
  0x22   :  { %v88_v15 = vsub.f32 0.0, %v84_v11  ;;  %v89_v16 = vsub.f32 0.0, %v85_v12  ;;  %v90_v17 = vmul.f32 1.442695, %v86_v13  ;;  %vm139_vm1 = vcmp.gt.f32.partialorder %v339_v1, 0.5 }
  0x23   :  { %v92_v18 = vmul.f32 1.442695, %v87_v14  ;;  %v69_v22 = vcvt.s32.f32 %v65_v10  ;;  %vm140_vm2 = vcmp.gt.f32.partialorder %v341_v3, 0.5  ;;  %v142_v25 = vsub.f32 1.0, %v66_v19  ;;  %p264_p13 = por %p263_p12, %p262_p11 }
  0x24   :  { %201 = vpow2.f32 %v90_v17  ;;  %v94_v23 = vmul.f32 1.442695, %v88_v15  ;;  %v96_v24 = vmul.f32 1.442695, %v89_v16  ;;  %v143_v26 = vsub.f32 1.0, %v67_v20 }
  0x25   :  { %203 = vpow2.f32 %v92_v18  ;;  %vm141_vm3 = vcmp.gt.f32.partialorder %v343_v4, 0.5  ;;  %v144_v27 = vsub.f32 1.0, %v68_v21  ;;  %v145_v28 = vsub.f32 1.0, %v69_v22  ;;  %p265_p0 = pnand %p264_p13, %p258_p10 }
  0x26   :  { %205 = vpow2.f32 %v94_v23  ;;  %v146_v29 = vsel %vm138_vm0, %v66_v19, %v142_v25  ;;  %v147_v30 = vsel %vm139_vm1, %v67_v20, %v143_v26 }
  0x27   :  { %207 = vpow2.f32 %v96_v24  ;;  %v148_v31 = vsel %vm140_vm2, %v68_v21, %v144_v27  ;;  %v154_v32 = vadd.f32 %v147_v30, %v146_v29  ;;  %v149_v33 = vsel %vm141_vm3, %v69_v22, %v145_v28 }
  0x29   :  { %v155_v34 = vadd.f32 %v154_v32, %v148_v31 }
  0x2b   :  { %v156_v35 = vadd.f32 %v155_v34, %v149_v33 }
  0x2d   :  { %163 = vst [vmem:[#allocation8] sm:$0xff] %v156_v35 }
  0x31   :  { %v202_v36 = vpop.eup %201 }
  0x32   :  { %268 = shalt.err (!%p265_p0)
}
  0x33   :  { %183 = dma.vmem_to_hbm [thread:$0]  %s181_s1, 128, %s384_s3, [#allocation9]   ;;  %v204_v37 = vpop.eup %203  ;;  %v98_v38 = vadd.f32 1.0, %v202_v36  ;;  %v101_v44 = vmul.f32 -0.5, %v202_v36  ;;  %v70_v49 = vmax.f32 %v337_v0, 0.0  ;;  %v74_v50 = vmul.f32 %v66_v19, %v337_v0 }
  0x34   :  { %v206_v39 = vpop.eup %205  ;;  %v107_v40 = vadd.f32 1.0, %v204_v37  ;;  %v110_v45 = vmul.f32 -0.5, %v204_v37  ;;  %v104_v51 = vand.u32 2147483647, %v202_v36  ;;  %v71_v53 = vmax.f32 %v339_v1, 0.0  ;;  %s310_s3 = smov [#allocation7]  }
  0x35   :  { %v208_v41 = vpop.eup %207  ;;  %209 = vlog2.f32 %v98_v38  ;;  %v116_v42 = vadd.f32 1.0, %v206_v39  ;;  %v119_v46 = vmul.f32 -0.5, %v206_v39  ;;  %v102_v47 = vadd.f32 1.0, %v101_v44  ;;  %s170_s27 = sshll.u32 %s310_s3, 4  ;;  %s171_s27 = int_to_ptr.vmem [resolvable:$true] %s170_s27 }
  0x36   :  { %211 = vlog2.f32 %v107_v40  ;;  %v125_v43 = vadd.f32 1.0, %v208_v41  ;;  %v128_v48 = vmul.f32 -0.5, %v208_v41  ;;  %v111_v52 = vadd.f32 1.0, %v110_v45  ;;  %s277_s28 = scalar_lea.vmem %s171_s27, 128  ;;  %p282_p2 = scmp.lt.s32.totalorder %s171_s27, %s171_s27 }
  0x37   :  { %213 = vlog2.f32 %v116_v42  ;;  %v75_v54 = vmul.f32 %v67_v20, %v339_v1  ;;  %v113_v55 = vand.u32 2147483647, %v204_v37  ;;  %v120_v56 = vadd.f32 1.0, %v119_v46  ;;  %p278_p1 = scmp.ne.s32.totalorder %s171_s27, %s277_s28  ;;  %p283_p3 = scmp.lt.s32.totalorder %s277_s28, %s277_s28 }
  0x38   :  { %215 = vlog2.f32 %v125_v43  ;;  %v72_v57 = vmax.f32 %v341_v3, 0.0  ;;  %v76_v58 = vmul.f32 %v68_v21, %v341_v3  ;;  %v122_v59 = vand.u32 2147483647, %v206_v39 }
  0x39   :  { %v73_v60 = vmax.f32 %v343_v4, 0.0  ;;  %v77_v61 = vmul.f32 %v69_v22, %v343_v4  ;;  %v103_v62 = vmul.f32 %v202_v36, %v102_v47  ;;  %v129_v63 = vadd.f32 1.0, %v128_v48  ;;  %p284_p4 = por %p283_p3, %p282_p2 }
  0x3a   :  { %v78_v2 = vsub.f32 %v70_v49, %v74_v50  ;;  %vm366_vm4 = vcmp.lt.f32.partialorder %v104_v51, 0.0004427343  ;;  %v112_v1 = vmul.f32 %v204_v37, %v111_v52  ;;  %v131_v6 = vand.u32 2147483647, %v208_v41 }
  0x3b   :  { %v79_v8 = vsub.f32 %v71_v53, %v75_v54  ;;  %vm370_vm5 = vcmp.lt.f32.partialorder %v113_v55, 0.0004427343  ;;  %v121_v10 = vmul.f32 %v206_v39, %v120_v56  ;;  %v80_v4 = vsub.f32 %v72_v57, %v76_v58  ;;  %p285_p5 = pnand %p284_p4, %p278_p1 }
  0x3c   :  { %vm123_vm6 = vcmp.lt.f32.partialorder %v122_v59, 0.0004427343  ;;  %v130_v15 = vmul.f32 %v208_v41, %v129_v63  ;;  %v81_v17 = vsub.f32 %v73_v60, %v77_v61  ;;  %vm132_vm7 = vcmp.lt.f32.partialorder %v131_v6, 0.0004427343 }
  0x42   :  { %v210_v0 = vpop.eup %209 }
  0x43   :  { %v212_v7 = vpop.eup %211  ;;  %v100_v9 = vmul.f32 0.6931472, %v210_v0 }
  0x44   :  { %v214_v11 = vpop.eup %213  ;;  %v109_v12 = vmul.f32 0.6931472, %v212_v7 }
  0x45   :  { %v106_v13 = vsel %vm366_vm4, %v103_v62, %v100_v9  ;;  %v118_v14 = vmul.f32 0.6931472, %v214_v11  ;;  %v216_v16 = vpop.eup %215 }
  0x46   :  { %v115_v18 = vsel %vm370_vm5, %v112_v1, %v109_v12  ;;  %v134_v19 = vadd.f32 %v106_v13, %v78_v2  ;;  %v127_v21 = vmul.f32 0.6931472, %v216_v16 }
  0x47   :  { %v124_v20 = vsel %vm123_vm6, %v121_v10, %v118_v14  ;;  %v135_v22 = vadd.f32 %v115_v18, %v79_v8 }
  0x48   :  { %v136_v23 = vadd.f32 %v124_v20, %v80_v4  ;;  %v133_v24 = vsel %vm132_vm7, %v130_v15, %v127_v21 }
  0x49   :  { %v150_v25 = vadd.f32 %v135_v22, %v134_v19  ;;  %v137_v26 = vadd.f32 %v133_v24, %v81_v17 }
  0x4b   :  { %v151_v27 = vadd.f32 %v150_v25, %v136_v23 }
  0x4d   :  { %v152_v28 = vadd.f32 %v151_v27, %v137_v26 }
  0x4f   :  { %160 = vst [vmem:[#allocation7] sm:$0xff] %v152_v28 }
  0x50   :  { %288 = shalt.err (!%p285_p5)
}
  0x51   :  { %173 = dma.vmem_to_hbm [thread:$0]  %s171_s27, 128, %s383_s2, [#allocation4]  }
  0x52   :  { %301 = dma.done.wait [#allocation4], 128  }
  0x53   :  { %302 = vsyncadd [#allocation4], 4294967168 }
  0x54   :  { %303 = dma.done.wait [#allocation9], 128  }
  0x55   :  { %304 = vsyncadd [#allocation9], 4294967168 }
  0x56   :  { %190 = vsyncpa [#allocation3], 1 }
  0x57   :  { %191 = vsyncpa [#allocation6], 1 }
  0x58   :  { %192 = vsyncpa [#allocation4], 1 }
  0x59   :  { %193 = vsyncpa [#allocation9], 1 }

</bundles_post_ra>
